<compile_context>
chip_gen: v7x
topology: tpu7x:2x2x1
jax: 0.10.0
libtpu: 0.0.40
codegen_flags: <defaults>
</compile_context>

<pallas_src>
import functools

import jax
import jax.numpy as jnp
from jax.experimental import pallas as pl
from jax.experimental.pallas import tpu as pltpu


def _round_up(x, m):
    return ((x + m - 1) // m) * m


def _vmem_capacity_bytes():
    try:
        cap = getattr(pltpu.get_tpu_info(), "vmem_capacity_bytes", None)
        if cap:
            return int(cap)
    except Exception:
        pass
    return 64 << 20  # v7x per-TC capacity: safe lower bound on every target


def _num_tensorcores():
    try:
        d = jax.devices()[0]
        kind = str(getattr(d, "device_kind", "")).lower()
        if "v7" in kind:
            return 2
        return max(1, int(getattr(d, "num_cores", 1)))
    except Exception:
        return 1


def _leaky(y, alpha):
    # One VPU op for the common 0 <= alpha <= 1 case.  (Differs from the
    # where-form only on NaN/Inf inputs, e.g. alpha=0 with y=+inf.)
    if 0.0 <= alpha <= 1.0:
        return jnp.maximum(y, alpha * y)
    return jnp.where(y >= 0, y, alpha * y)


# ----------------------------- kernels ------------------------------------ #

def _kernel_single_k(x_ref, w_ref, b_ref, o_ref, *, alpha):
    # Whole K in one tile: no accumulator, no init/finalize phases.
    y = jnp.dot(x_ref[...], w_ref[...], preferred_element_type=jnp.float32)
    o_ref[...] = _leaky(y + b_ref[...], alpha).astype(o_ref.dtype)


def _kernel_multi_k_accout(x_ref, w_ref, b_ref, o_ref, *, alpha):
    # f32 output: o_ref itself is the accumulator (resident across the K axis).
    k = pl.program_id(2)

    @pl.when(k == 0)
    def _():
        o_ref[...] = jnp.zeros_like(o_ref)

    o_ref[...] += jnp.dot(x_ref[...], w_ref[...],
                          preferred_element_type=jnp.float32)

    @pl.when(k == pl.num_programs(2) - 1)
    def _():
        o_ref[...] = _leaky(o_ref[...] + b_ref[...], alpha)


def _kernel_multi_k_scratch(x_ref, w_ref, b_ref, o_ref, acc_ref, *, alpha):
    # Non-f32 output: accumulate in an f32 VMEM scratch, cast on the last step.
    k = pl.program_id(2)

    @pl.when(k == 0)
    def _():
        acc_ref[...] = jnp.zeros_like(acc_ref)

    acc_ref[...] += jnp.dot(x_ref[...], w_ref[...],
                            preferred_element_type=jnp.float32)

    @pl.when(k == pl.num_programs(2) - 1)
    def _():
        o_ref[...] = _leaky(acc_ref[...] + b_ref[...], alpha).astype(o_ref.dtype)


# --------------------------- tile selection -------------------------------- #

def _select_tiles(M, N, K, in_bytes, out_bytes, scratch_bytes, vmem_budget,
                  m_gran):
    Mp_min = _round_up(max(M, 1), m_gran)
    Np_min = _round_up(max(N, 1), 128)
    Kp_min = _round_up(max(K, 1), 128)

    # tm: full-M for small/moderate batch (W streamed from HBM exactly once);
    # otherwise a large MXU tile with bounded padding waste.
    if Mp_min <= 1024:
        tm = Mp_min
    else:
        tm = 256
        for cand in (1024, 512, 256):
            if _round_up(M, cand) - M <= max(M // 8, cand // 8):
                tm = cand
                break

    # tn: single lane-dense tile when N is moderate, else a big tile with
    # bounded padding waste.
    if Np_min <= 2048:
        tn = Np_min
    else:
        tn = 2048
        for cand in (2048, 1536, 1024, 512):
            if _round_up(N, cand) - N <= max(N // 8, cand // 8):
                tn = cand
                break

    # tk: as large as fits (amortizes ~0.35us/grid-step and widens the
    # single-K specialization), capped at 2048.
    tk = min(Kp_min, 2048)

    def est(tm_, tn_, tk_):
        e = 2 * (tm_ * tk_ + tk_ * tn_) * in_bytes   # double-buffered x, W tiles
        e += 2 * tm_ * tn_ * out_bytes               # double-buffered out tile
        e += tm_ * tn_ * scratch_bytes               # f32 acc scratch (if any)
        e += 2 * tn_ * 4                             # bias tile
        return e

    while est(tm, tn, tk) > vmem_budget:
        if tk > 512:
            tk = max(512, _round_up(tk // 2, 128))
        elif tn > 512:
            tn = max(512, _round_up(tn // 2, 128))
        elif tm > 256:
            tm = max(256, _round_up(tm // 2, m_gran))
        elif tn > 128:
            tn = max(128, _round_up(tn // 2, 128))
        elif tk > 128:
            tk = max(128, _round_up(tk // 2, 128))
        elif tm > m_gran:
            tm = max(m_gran, _round_up(tm // 2, m_gran))
        else:
            break
    return tm, tn, tk


# ------------------------------ wrapper ------------------------------------ #

def linear_leaky_relu(x, weight, bias, *, alpha=0.2, tm=None, tn=None, tk=None,
                      use_bf16_mxu=True):
    """y = leaky_relu(x @ weight.T + bias, alpha).

    x: (..., K); weight: (N, K) (PyTorch nn.Linear layout); bias: (N,).

    NOTE: use_bf16_mxu=True (default) rounds f32 operands to bf16 for the MXU
    while accumulating in f32 -- ~1e-3 relative deviation from a pure-f32
    PyTorch Linear.  Pass use_bf16_mxu=False for full-f32 MXU math.
    """
    orig_shape = x.shape
    K = x.shape[-1]
    x2d = x.reshape(-1, K)
    M = x2d.shape[0]
    N, K2 = weight.shape
    assert K == K2, "in_features mismatch"
    out_dtype = x.dtype

    compute_dtype = (jnp.bfloat16
                     if (use_bf16_mxu and x.dtype == jnp.float32)
                     else x.dtype)
    in_bytes = jnp.dtype(compute_dtype).itemsize
    out_bytes = jnp.dtype(out_dtype).itemsize
    acc_in_out = (jnp.dtype(out_dtype) == jnp.dtype(jnp.float32))
    scratch_bytes = 0 if acc_in_out else 4
    m_gran = 16 if compute_dtype == jnp.bfloat16 else 8

    vmem_cap = _vmem_capacity_bytes()
    vmem_budget = max(int(0.60 * vmem_cap), 24 << 20)

    atm, atn, atk = _select_tiles(M, N, K, in_bytes, out_bytes, scratch_bytes,
                                  vmem_budget, m_gran)
    auto_tiles = (tm is None and tn is None and tk is None)
    tm = atm if tm is None else tm
    tn = atn if tn is None else tn
    tk = atk if tk is None else tk

    # Megacore (v7x): make sure both TensorCores get at least one (i, j) block.
    if auto_tiles and _num_tensorcores() >= 2:
        if pl.cdiv(M, tm) * pl.cdiv(N, tn) < 2:
            if tn >= 256 and tn % 256 == 0:
                tn //= 2
            elif tm >= 2 * m_gran and tm % (2 * m_gran) == 0:
                tm //= 2

    Mp, Np, Kp = _round_up(M, tm), _round_up(N, tn), _round_up(K, tk)
    grid_m, grid_n, grid_k = Mp // tm, Np // tn, Kp // tk

    # --- One fused wrapper pass per operand: (transpose,) cast, zero-pad. ---
    def _prep(a, pads):
        if a.dtype != compute_dtype:
            a = a.astype(compute_dtype)
        if any(p for _, p in pads):
            a = jnp.pad(a, pads)
        return a

    x_p = _prep(x2d, ((0, Mp - M), (0, Kp - K)))
    w_p = _prep(weight.T, ((0, Kp - K), (0, Np - N)))    # (Kp, Np): MXU-native
    b_p = bias.astype(jnp.float32)
    if Np != N:
        b_p = jnp.pad(b_p, (0, Np - N))
    b2d = b_p.reshape(1, Np)

    # --- VMEM limit: generation-aware cap, never below the tile estimate. ---
    vmem_est = (2 * (tm * tk + tk * tn) * in_bytes
                + 2 * tm * tn * out_bytes
                + (0 if (acc_in_out or grid_k == 1) else tm * tn * 4)
                + 2 * tn * 4)
    vmem_limit = max(vmem_est + (4 << 20), 32 << 20)
    vmem_limit = min(vmem_limit, int(0.85 * vmem_cap))
    vmem_limit = max(vmem_limit, vmem_est + (2 << 20))

    if grid_k == 1:
        kernel = functools.partial(_kernel_single_k, alpha=float(alpha))
        grid = (grid_m, grid_n)
        in_specs = [
            pl.BlockSpec((tm, tk), lambda i, j: (i, 0)),   # x tile
            pl.BlockSpec((tk, tn), lambda i, j: (0, j)),   # W tile (K, N)
            pl.BlockSpec((1, tn), lambda i, j: (0, j)),    # bias (f32)
        ]
        out_specs = pl.BlockSpec((tm, tn), lambda i, j: (i, j))
        scratch_shapes = []
        dim_sem = ("parallel", "parallel")
    else:
        grid = (grid_m, grid_n, grid_k)
        in_specs = [
            pl.BlockSpec((tm, tk), lambda i, j, k: (i, k)),   # x tile
            pl.BlockSpec((tk, tn), lambda i, j, k: (k, j)),   # W tile (K, N)
            pl.BlockSpec((1, tn), lambda i, j, k: (0, j)),    # bias (f32)
        ]
        out_specs = pl.BlockSpec((tm, tn), lambda i, j, k: (i, j))
        dim_sem = ("parallel", "parallel", "arbitrary")
        if acc_in_out:
            kernel = functools.partial(_kernel_multi_k_accout, alpha=float(alpha))
            scratch_shapes = []
        else:
            kernel = functools.partial(_kernel_multi_k_scratch, alpha=float(alpha))
            scratch_shapes = [pltpu.VMEM((tm, tn), jnp.float32)]

    out_padded = pl.pallas_call(
        kernel,
        out_shape=jax.ShapeDtypeStruct((Mp, Np), out_dtype),
        grid_spec=pltpu.PrefetchScalarGridSpec(
            num_scalar_prefetch=0,
            grid=grid,
            in_specs=in_specs,
            out_specs=out_specs,
            scratch_shapes=scratch_shapes,
        ),
        compiler_params=pltpu.CompilerParams(
            dimension_semantics=dim_sem,
            vmem_limit_bytes=int(vmem_limit),
        ),
    )(x_p, w_p, b2d)

    out = out_padded
    if (Mp, Np) != (M, N):
        out = out[:M, :N]
    return out.reshape(*orig_shape[:-1], N)


def _reference(x, weight, bias, alpha=0.2):
    y = x @ weight.T + bias
    return jnp.where(y >= 0, y, alpha * y)


if __name__ == "__main__":
    in_features = 32
    out_features = 64
    batch = 8
    alpha = 0.2

    key = jax.random.PRNGKey(0)
    kx, kw, kb = jax.random.split(key, 3)

    # Deterministic PyTorch-style init: U(-1/sqrt(fan_in), 1/sqrt(fan_in))
    bound = 1.0 / (in_features ** 0.5)
    weight = jax.random.uniform(
        kw, (out_features, in_features), jnp.float32, -bound, bound)
    bias = jax.random.uniform(kb, (out_features,), jnp.float32, -bound, bound)
    x = jax.random.normal(kx, (batch, in_features), jnp.float32)

    fn = jax.jit(functools.partial(linear_leaky_relu, alpha=alpha))
    out = jax.block_until_ready(fn(x, weight, bias))
    assert out.shape == (batch, out_features)

    # Tight check vs. a reference with the same bf16 operand rounding
    # (bf16 x bf16 products are exact in f32; accumulation is f32).
    x_b = x.astype(jnp.bfloat16).astype(jnp.float32)
    w_b = weight.astype(jnp.bfloat16).astype(jnp.float32)
    ref_bf16 = _reference(x_b, w_b, bias, alpha)
    assert jnp.allclose(out, ref_bf16, atol=1e-4, rtol=1e-4), "mismatch vs bf16 ref"

    # Loose sanity check vs. full-f32 reference.
    ref_f32 = _reference(x, weight, bias, alpha)
    assert jnp.allclose(out, ref_f32, atol=5e-2, rtol=5e-2), "mismatch vs f32 ref"

    # Exercise the multi-K path (accumulate-into-o_ref) with forced small tiles.
    M2, K2n, N2 = 16, 384, 256
    kx2, kw2, kb2 = jax.random.split(jax.random.PRNGKey(1), 3)
    bound2 = 1.0 / (K2n ** 0.5)
    w2 = jax.random.uniform(kw2, (N2, K2n), jnp.float32, -bound2, bound2)
    b2 = jax.random.uniform(kb2, (N2,), jnp.float32, -bound2, bound2)
    x2 = jax.random.normal(kx2, (M2, K2n), jnp.float32)
    fn2 = jax.jit(functools.partial(linear_leaky_relu, alpha=alpha,
                                    tm=16, tn=128, tk=128))
    out2 = jax.block_until_ready(fn2(x2, w2, b2))
    ref2 = _reference(x2.astype(jnp.bfloat16).astype(jnp.float32),
                      w2.astype(jnp.bfloat16).astype(jnp.float32), b2, alpha)
    assert jnp.allclose(out2, ref2, atol=1e-3, rtol=1e-3), "mismatch (multi-K f32)"

    # Exercise the multi-K scratch path (non-f32 output).
    fn3 = jax.jit(functools.partial(linear_leaky_relu, alpha=alpha,
                                    tm=16, tn=128, tk=128))
    out3 = jax.block_until_ready(
        fn3(x2.astype(jnp.bfloat16), w2.astype(jnp.bfloat16), b2))
    assert out3.dtype == jnp.bfloat16
    assert jnp.allclose(out3.astype(jnp.float32), ref2, atol=2e-2, rtol=2e-2), \
        "mismatch (multi-K bf16 out)"

    print("KERNEL_OK")
</pallas_src>

<mosaic_0001>
module attributes {stable_mosaic.version = 11 : i64} {
  func.func @_kernel_single_k(%arg0: i32, %arg1: i32, %arg2: memref<16x128xbf16, #tpu.memory_space<vmem>>, %arg3: memref<128x128xbf16, #tpu.memory_space<vmem>>, %arg4: memref<1x128xf32, #tpu.memory_space<vmem>>, %arg5: memref<16x128xf32, #tpu.memory_space<vmem>>) attributes {dimension_semantics = [#tpu.dimension_semantics<parallel>, #tpu.dimension_semantics<parallel>], iteration_bounds = array<i64: 1, 1>, scalar_prefetch = 0 : i64, scratch_operands = 0 : i64, tpu.core_type = #tpu.core_type<tc>, window_params = [{transform_indices = @transform_0, window_bounds = array<i64: 16, 128>}, {transform_indices = @transform_1, window_bounds = array<i64: 128, 128>}, {transform_indices = @transform_2, window_bounds = array<i64: 1, 128>}, {transform_indices = @transform_3, window_bounds = array<i64: 16, 128>}]} {
    %c0 = arith.constant 0 : index
    %c0_0 = arith.constant 0 : index
    %0 = vector.load %arg2[%c0, %c0_0] : memref<16x128xbf16, #tpu.memory_space<vmem>>, vector<16x128xbf16>
    %c0_1 = arith.constant 0 : index
    %c0_2 = arith.constant 0 : index
    %1 = vector.load %arg3[%c0_1, %c0_2] : memref<128x128xbf16, #tpu.memory_space<vmem>>, vector<128x128xbf16>
    %cst = arith.constant dense<0.000000e+00> : vector<16x128xf32>
    %2 = tpu.matmul %0, %1, %cst {dimension_numbers = #tpu.dot_dimension_numbers<[1], [0], [0], [1], [0, 0, 1, 1], [], []>} : vector<16x128xbf16>, vector<128x128xbf16>, vector<16x128xf32> -> vector<16x128xf32>
    %c0_3 = arith.constant 0 : index
    %c0_4 = arith.constant 0 : index
    %3 = vector.load %arg4[%c0_3, %c0_4] : memref<1x128xf32, #tpu.memory_space<vmem>>, vector<1x128xf32>
    %4 = vector.broadcast %3 : vector<1x128xf32> to vector<16x128xf32>
    %5 = arith.addf %2, %4 : vector<16x128xf32>
    %cst_5 = arith.constant 2.000000e-01 : f32
    %6 = vector.broadcast %cst_5 : f32 to vector<16x128xf32>
    %7 = arith.mulf %6, %5 : vector<16x128xf32>
    %8 = arith.maximumf %5, %7 : vector<16x128xf32>
    %c0_6 = arith.constant 0 : index
    %c0_7 = arith.constant 0 : index
    %9 = vector.load %arg5[%c0_6, %c0_7] : memref<16x128xf32, #tpu.memory_space<vmem>>, vector<16x128xf32>
    tpu.vector_store %arg5[%c0_6, %c0_7], %8 {strides = array<i32>} : memref<16x128xf32, #tpu.memory_space<vmem>>, vector<16x128xf32>,
    return
  }
  func.func @transform_0(%arg0: i32, %arg1: i32) -> (i32, i32) {
    %c0_i32 = arith.constant 0 : i32
    %c0_i32_0 = arith.constant 0 : i32
    return %arg0, %c0_i32 : i32, i32
  }
  func.func @transform_1(%arg0: i32, %arg1: i32) -> (i32, i32) {
    %c0_i32 = arith.constant 0 : i32
    %c0_i32_0 = arith.constant 0 : i32
    return %c0_i32, %arg1 : i32, i32
  }
  func.func @transform_2(%arg0: i32, %arg1: i32) -> (i32, i32) {
    %c0_i32 = arith.constant 0 : i32
    %c0_i32_0 = arith.constant 0 : i32
    return %c0_i32, %arg1 : i32, i32
  }
  func.func @transform_3(%arg0: i32, %arg1: i32) -> (i32, i32) {
    %c0_i32 = arith.constant 0 : i32
    return %arg0, %arg1 : i32, i32
  }
}

</mosaic_0001>

<bundles_post_ra>
// kernel: linear_leaky_relu.1
= control target key start
LH: loop header
LB: loop body
LE: loop exit
PB: predicated region body
PF: predicated region fallthrough
CT: control target
= control target key end

     0   :  { %v195_v0 = vmov 0.0   ;;  %vm196_vm0 = vmmov 0   ;;  %s253_s1 = inlined_call_operand.vmem [shape: bf16[128,128], index: 1, kind: input, shape index: {}]   ;;  %s254_s0 = inlined_call_operand.vmem [shape: bf16[16,128], index: 0, kind: input, shape index: {}]   ;;  %s255_s2 = inlined_call_operand.vmem [shape: f32[1,128], index: 2, kind: input, shape index: {}]   ;;  %s256_s3 = inlined_call_operand.vmem [shape: f32[16,128], index: 3, kind: output, shape index: {}]  }
   0x1   :  { %164 = vmatprep.subr.bf16.mxu0 %v195_v0  ;;  %v186_v1 = vld [vmem:[%s253_s1] sm:$0xff]   ;;  %180 = vmatprep.mubr.msk.bf16.mxu0 %vm196_vm0, %v195_v0  ;;  %v187_v2 = vld [vmem:[%s253_s1 + $0x8] sm:$0xff]   ;;  %v188_v3 = vld [vmem:[%s253_s1 + $0x10] sm:$0xff]  }
   0x2   :  { %165 = vmatpush3.bf16.msra.mxu0 %v186_v1  ;;  %v189_v4 = vld [vmem:[%s253_s1 + $0x18] sm:$0xff]   ;;  %v190_v5 = vld [vmem:[%s253_s1 + $0x20] sm:$0xff]   ;;  %v191_v6 = vld [vmem:[%s253_s1 + $0x28] sm:$0xff]  }
   0x3   :  { %166 = vmatprep.subr.bf16.mxu0 %v195_v0  ;;  %v192_v7 = vld [vmem:[%s253_s1 + $0x30] sm:$0xff]   ;;  %v193_v8 = vld [vmem:[%s253_s1 + $0x38] sm:$0xff]   ;;  %v194_v9 = vld [vmem:[%s254_s0] sm:$0xff]  }
   0x4   :  { %v145_v10 = vld [vmem:[%s255_s2] ss:$0 sm:$0xff] }
   0x6   :  { %167 = vmatpush3.bf16.msra.mxu0 %v187_v2 }
   0x7   :  { %168 = vmatprep.subr.bf16.mxu0 %v195_v0 }
   0xa   :  { %169 = vmatpush3.bf16.msra.mxu0 %v188_v3 }
   0xb   :  { %170 = vmatprep.subr.bf16.mxu0 %v195_v0 }
   0xe   :  { %171 = vmatpush3.bf16.msra.mxu0 %v189_v4 }
   0xf   :  { %172 = vmatprep.subr.bf16.mxu0 %v195_v0 }
  0x12   :  { %173 = vmatpush3.bf16.msra.mxu0 %v190_v5 }
  0x13   :  { %174 = vmatprep.subr.bf16.mxu0 %v195_v0 }
  0x16   :  { %175 = vmatpush3.bf16.msra.mxu0 %v191_v6 }
  0x17   :  { %176 = vmatprep.subr.bf16.mxu0 %v195_v0 }
  0x1a   :  { %177 = vmatpush3.bf16.msra.mxu0 %v192_v7 }
  0x1b   :  { %178 = vmatprep.subr.bf16.mxu0 %v195_v0 }
  0x1e   :  { %179 = vmatpush3.bf16.msra.mxu0 %v193_v8 }
  0x21   :  { %181 = vmatmul.mubr.bf16.vlgmr.msra.gmra.mrb[0].mxu0 %v194_v9 }
  0xf4   :  { %v128_v11 = vpop.f32.mrb[0].mxu0 }
  0xf5   :  { %v129_v12 = vadd.f32 %v145_v10, %v128_v11  ;;  %v182_v13 = vpop.f32.mrb[1].mxu0 }
  0xf6   :  { %v131_v14 = vpop.f32.mrb[2].mxu0 }
  0xf7   :  { %v135_v15 = vmul.f32 0.2, %v129_v12  ;;  %v132_v16 = vadd.f32 %v145_v10, %v131_v14  ;;  %v183_v17 = vpop.f32.mrb[3].mxu0 }
  0xf9   :  { %v137_v18 = vmax.f32 %v129_v12, %v135_v15  ;;  %v136_v19 = vmul.f32 0.2, %v132_v16 }
  0xfb   :  { %139 = vst [vmem:[%s256_s3] sm:$0xff] %v137_v18  ;;  %v138_v20 = vmax.f32 %v132_v16, %v136_v19 }
  0xfd   :  { %140 = vst [vmem:[%s256_s3 + $0x8] sm:$0xff] %v138_v20 }

</bundles_post_ra>
